<compile_context>
chip_gen: v6e
topology: v6e:2x2x1
jax: 0.10.0
libtpu: 0.0.40
codegen_flags: <defaults>
</compile_context>

<pallas_src>
import functools

import jax
import jax.numpy as jnp
from jax.experimental import pallas as pl
from jax.experimental.pallas import tpu as pltpu

EPS = 1e-10


def _ce_dice_kernel(logits_ref, tgt_ref,
                    inter_ref, psum_ref, lsum_ref, ce_ref):
    """One (C, T) pixel tile of one batch element.

    Accumulates per-class dice statistics and the CE sum into the per-batch
    output blocks (resident across the pixel-tile grid axis).
    """
    j = pl.program_id(1)

    @pl.when(j == 0)
    def _init():
        inter_ref[...] = jnp.zeros_like(inter_ref)
        psum_ref[...] = jnp.zeros_like(psum_ref)
        lsum_ref[...] = jnp.zeros_like(lsum_ref)
        ce_ref[...] = jnp.zeros_like(ce_ref)

    x = logits_ref[...].astype(jnp.float32)           # (C, T)
    t = tgt_ref[...]                                  # (1, T) int32
    num_classes, tile = x.shape

    # Softmax over the (tiny) class axis; all lane-wise VPU/EUP work.
    m = jnp.max(x, axis=0, keepdims=True)             # (1, T)
    e = jnp.exp(x - m)                                # (C, T)
    s = jnp.sum(e, axis=0, keepdims=True)             # (1, T)
    probs = e * pl.reciprocal(s, approx=False)        # (C, T)

    # One-hot labels (needed for the dice label sums anyway).
    class_ids = jax.lax.broadcasted_iota(jnp.int32, (num_classes, tile), 0)
    onehot = (t == class_ids).astype(jnp.float32)     # (C, T)

    # Per-pixel cross entropy: logsumexp(x) - x[target].
    x_at_t = jnp.sum(x * onehot, axis=0, keepdims=True)   # (1, T)
    ce_pix = (m + jnp.log(s)) - x_at_t                      # (1, T)

    # Reduce over the pixel (lane) axis and accumulate into the per-batch
    # output blocks.  The minor-axis reduce is mostly vreg-wise VPU adds plus
    # a single cross-lane XLU reduce per statistic, which is fully hidden
    # under the DMA in this HBM-bound kernel.
    inter_ref[...] += jnp.sum(probs * onehot, axis=1, keepdims=True)   # (C, 1)
    psum_ref[...] += jnp.sum(probs, axis=1, keepdims=True)             # (C, 1)
    lsum_ref[...] += jnp.sum(onehot, axis=1, keepdims=True)            # (C, 1)
    ce_ref[...] += jnp.sum(ce_pix, axis=1, keepdims=True)              # (1, 1)


def _pick_tile(hw, max_tile):
    """Largest pixel tile that is a divisor of hw and a multiple of 128
    (or the full row if hw is small / has no such divisor)."""
    if hw <= max_tile:
        return hw
    t = (max_tile // 128) * 128
    while t >= 128:
        if hw % t == 0:
            return t
        t -= 128
    # TODO(synk): add tail masking / padding for huge H*W with no 128-multiple
    # divisor instead of falling back to a full-row tile.
    return hw


def ce_dice_loss(inputs, targets, *, alpha=0.5, num_classes=3,
                 max_tile=128 * 1024):
    """inputs: (B, C, H, W) float logits, targets: (B, H, W) int labels."""
    B, C, H, W = inputs.shape
    assert C == num_classes
    HW = H * W
    P = B * HW

    tile = _pick_tile(HW, max_tile)
    n_tiles = HW // tile

    # Free, contiguous reshapes -- no transpose, no extra HBM pass.
    logits = inputs.reshape(B, C, HW)
    tgt = targets.reshape(B, 1, HW).astype(jnp.int32)

    out_shapes = (
        jax.ShapeDtypeStruct((B, C, 1), jnp.float32),   # intersection per class
        jax.ShapeDtypeStruct((B, C, 1), jnp.float32),   # softmax sum per class
        jax.ShapeDtypeStruct((B, C, 1), jnp.float32),   # label sum per class
        jax.ShapeDtypeStruct((B, 1, 1), jnp.float32),   # CE sum
    )

    grid_spec = pltpu.PrefetchScalarGridSpec(
        num_scalar_prefetch=0,
        grid=(B, n_tiles),
        in_specs=[
            pl.BlockSpec((None, C, tile), lambda b, j: (b, 0, j)),
            pl.BlockSpec((None, 1, tile), lambda b, j: (b, 0, j)),
        ],
        out_specs=[
            pl.BlockSpec((None, C, 1), lambda b, j: (b, 0, 0)),
            pl.BlockSpec((None, C, 1), lambda b, j: (b, 0, 0)),
            pl.BlockSpec((None, C, 1), lambda b, j: (b, 0, 0)),
            pl.BlockSpec((None, 1, 1), lambda b, j: (b, 0, 0)),
        ],
    )

    cost = pl.CostEstimate(
        flops=int(12 * P * C),
        transcendentals=int(P * (C + 2)),            # exp + log + reciprocal
        bytes_accessed=int(P * (C + 1) * 4 + B * (3 * C + 1) * 4),
    )

    inter_p, psum_p, lsum_p, ce_p = pl.pallas_call(
        _ce_dice_kernel,
        out_shape=out_shapes,
        grid_spec=grid_spec,
        compiler_params=pltpu.CompilerParams(
            dimension_semantics=("parallel", "arbitrary")),
        cost_estimate=cost,
    )(logits, tgt)

    # Tiny final combine in plain JAX (per-batch partials -> scalar loss).
    inter_c = jnp.sum(inter_p[:, :, 0], axis=0)                      # (C,)
    union_c = jnp.sum(psum_p[:, :, 0], axis=0) + jnp.sum(lsum_p[:, :, 0], axis=0)
    dice = jnp.sum(1.0 - 2.0 * inter_c / (union_c + EPS))
    dice_loss = dice / B
    ce_mean = jnp.sum(ce_p) / P
    return alpha * ce_mean + dice_loss


def ce_dice_loss_ref(inputs, targets, *, alpha=0.5, num_classes=3):
    """Pure-JAX reference mirroring the PyTorch module."""
    probs = jax.nn.softmax(inputs, axis=1)
    dice = 0.0
    for c in range(num_classes):
        pred = probs[:, c, :, :]
        label = (targets == c).astype(jnp.float32)
        inter = jnp.sum(pred * label)
        union = jnp.sum(pred) + jnp.sum(label)
        dice += 1.0 - 2.0 * inter / (union + EPS)
    dice_loss = dice / inputs.shape[0]
    logp = jax.nn.log_softmax(inputs, axis=1)
    onehot = jax.nn.one_hot(targets, num_classes, axis=1, dtype=jnp.float32)
    ce = -jnp.mean(jnp.sum(logp * onehot, axis=1))
    return alpha * ce + dice_loss


if __name__ == "__main__":
    # CEDiceLoss(alpha=0.5, num_classes=3) has no learned parameters.
    B, C, H, W = 2, 3, 16, 16
    key = jax.random.PRNGKey(0)
    k_in, k_tgt = jax.random.split(key)
    inputs = jax.random.normal(k_in, (B, C, H, W), dtype=jnp.float32)
    targets = jax.random.randint(k_tgt, (B, H, W), 0, C, dtype=jnp.int32)

    loss = ce_dice_loss(inputs, targets, alpha=0.5, num_classes=C)
    loss = jax.block_until_ready(loss)

    ref = ce_dice_loss_ref(inputs, targets, alpha=0.5, num_classes=C)
    assert jnp.allclose(loss, ref, rtol=1e-4, atol=1e-4), (loss, ref)

    print("KERNEL_OK")
</pallas_src>

<mosaic_0001>
module attributes {stable_mosaic.version = 11 : i64} {
  func.func @_ce_dice_kernel(%arg0: i32, %arg1: i32, %arg2: memref<1x3x256xf32, #tpu.memory_space<vmem>>, %arg3: memref<1x1x256xi32, #tpu.memory_space<vmem>>, %arg4: memref<1x3x1xf32, #tpu.memory_space<vmem>>, %arg5: memref<1x3x1xf32, #tpu.memory_space<vmem>>, %arg6: memref<1x3x1xf32, #tpu.memory_space<vmem>>, %arg7: memref<1x1x1xf32, #tpu.memory_space<vmem>>) attributes {dimension_semantics = [#tpu.dimension_semantics<parallel>, #tpu.dimension_semantics<arbitrary>], iteration_bounds = array<i64: 2, 1>, scalar_prefetch = 0 : i64, scratch_operands = 0 : i64, tpu.core_type = #tpu.core_type<tc>, window_params = [{transform_indices = @transform_0, window_bounds = array<i64: 1, 3, 256>}, {transform_indices = @transform_1, window_bounds = array<i64: 1, 1, 256>}, {transform_indices = @transform_2, window_bounds = array<i64: 1, 3, 1>}, {transform_indices = @transform_3, window_bounds = array<i64: 1, 3, 1>}, {transform_indices = @transform_4, window_bounds = array<i64: 1, 3, 1>}, {transform_indices = @transform_5, window_bounds = array<i64: 1, 1, 1>}]} {
    %c0_i32 = arith.constant 0 : i32
    %0 = arith.cmpi eq, %arg1, %c0_i32 : i32
    %1 = arith.extui %0 : i1 to i32
    %c0_i32_0 = arith.constant 0 : i32
    %2 = arith.cmpi ne, %1, %c0_i32_0 : i32
    scf.if %2 {
      %cst_36 = arith.constant 0.000000e+00 : f32
      %61 = vector.broadcast %cst_36 : f32 to vector<3x1xf32>
      %c0_37 = arith.constant 0 : index
      %c0_38 = arith.constant 0 : index
      %c0_39 = arith.constant 0 : index
      %62 = vector.load %arg4[%c0_37, %c0_38, %c0_39] : memref<1x3x1xf32, #tpu.memory_space<vmem>>, vector<1x3x1xf32>
      %63 = vector.shape_cast %62 : vector<1x3x1xf32> to vector<3x1xf32>
      %64 = vector.shape_cast %61 : vector<3x1xf32> to vector<1x3x1xf32>
      tpu.vector_store %arg4[%c0_37, %c0_38, %c0_39], %64 {strides = array<i32>} : memref<1x3x1xf32, #tpu.memory_space<vmem>>, vector<1x3x1xf32>,
      %cst_40 = arith.constant 0.000000e+00 : f32
      %65 = vector.broadcast %cst_40 : f32 to vector<3x1xf32>
      %c0_41 = arith.constant 0 : index
      %c0_42 = arith.constant 0 : index
      %c0_43 = arith.constant 0 : index
      %66 = vector.load %arg5[%c0_41, %c0_42, %c0_43] : memref<1x3x1xf32, #tpu.memory_space<vmem>>, vector<1x3x1xf32>
      %67 = vector.shape_cast %66 : vector<1x3x1xf32> to vector<3x1xf32>
      %68 = vector.shape_cast %65 : vector<3x1xf32> to vector<1x3x1xf32>
      tpu.vector_store %arg5[%c0_41, %c0_42, %c0_43], %68 {strides = array<i32>} : memref<1x3x1xf32, #tpu.memory_space<vmem>>, vector<1x3x1xf32>,
      %cst_44 = arith.constant 0.000000e+00 : f32
      %69 = vector.broadcast %cst_44 : f32 to vector<3x1xf32>
      %c0_45 = arith.constant 0 : index
      %c0_46 = arith.constant 0 : index
      %c0_47 = arith.constant 0 : index
      %70 = vector.load %arg6[%c0_45, %c0_46, %c0_47] : memref<1x3x1xf32, #tpu.memory_space<vmem>>, vector<1x3x1xf32>
      %71 = vector.shape_cast %70 : vector<1x3x1xf32> to vector<3x1xf32>
      %72 = vector.shape_cast %69 : vector<3x1xf32> to vector<1x3x1xf32>
      tpu.vector_store %arg6[%c0_45, %c0_46, %c0_47], %72 {strides = array<i32>} : memref<1x3x1xf32, #tpu.memory_space<vmem>>, vector<1x3x1xf32>,
      %cst_48 = arith.constant 0.000000e+00 : f32
      %73 = vector.broadcast %cst_48 : f32 to vector<1x1xf32>
      %c0_49 = arith.constant 0 : index
      %c0_50 = arith.constant 0 : index
      %c0_51 = arith.constant 0 : index
      %74 = vector.load %arg7[%c0_49, %c0_50, %c0_51] : memref<1x1x1xf32, #tpu.memory_space<vmem>>, vector<1x1x1xf32>
      %75 = vector.shape_cast %74 : vector<1x1x1xf32> to vector<1x1xf32>
      %76 = vector.shape_cast %73 : vector<1x1xf32> to vector<1x1x1xf32>
      tpu.vector_store %arg7[%c0_49, %c0_50, %c0_51], %76 {strides = array<i32>} : memref<1x1x1xf32, #tpu.memory_space<vmem>>, vector<1x1x1xf32>,
    } else {
    }
    %c0 = arith.constant 0 : index
    %c0_1 = arith.constant 0 : index
    %c0_2 = arith.constant 0 : index
    %3 = vector.load %arg2[%c0, %c0_1, %c0_2] : memref<1x3x256xf32, #tpu.memory_space<vmem>>, vector<1x3x256xf32>
    %4 = vector.shape_cast %3 : vector<1x3x256xf32> to vector<3x256xf32>
    %c0_3 = arith.constant 0 : index
    %c0_4 = arith.constant 0 : index
    %c0_5 = arith.constant 0 : index
    %5 = vector.load %arg3[%c0_3, %c0_4, %c0_5] : memref<1x1x256xi32, #tpu.memory_space<vmem>>, vector<1x1x256xi32>
    %6 = vector.shape_cast %5 : vector<1x1x256xi32> to vector<1x256xi32>
    %cst = arith.constant dense<0xFF800000> : vector<256xf32>
    %7 = vector.multi_reduction <maximumf>, %4, %cst [0] : vector<3x256xf32> to vector<256xf32>
    %8 = vector.shape_cast %7 : vector<256xf32> to vector<1x256xf32>
    %9 = vector.broadcast %8 : vector<1x256xf32> to vector<3x256xf32>
    %10 = arith.subf %4, %9 : vector<3x256xf32>
    %11 = math.exp %10 : vector<3x256xf32>
    %cst_6 = arith.constant dense<0.000000e+00> : vector<256xf32>
    %12 = vector.multi_reduction <add>, %11, %cst_6 [0] : vector<3x256xf32> to vector<256xf32>
    %13 = vector.shape_cast %12 : vector<256xf32> to vector<1x256xf32>
    %14 = tpu.reciprocal %13 : vector<1x256xf32> -> vector<1x256xf32>
    %15 = vector.broadcast %14 : vector<1x256xf32> to vector<3x256xf32>
    %16 = arith.mulf %11, %15 : vector<3x256xf32>
    %17 = tpu.iota {dimensions = array<i32: 0>} : vector<3x256xi32>
    %18 = vector.broadcast %6 : vector<1x256xi32> to vector<3x256xi32>
    %19 = arith.cmpi eq, %18, %17 : vector<3x256xi32>
    %20 = arith.extui %19 : vector<3x256xi1> to vector<3x256xi32>
    %21 = arith.sitofp %20 : vector<3x256xi32> to vector<3x256xf32>
    %22 = arith.mulf %4, %21 : vector<3x256xf32>
    %cst_7 = arith.constant dense<0.000000e+00> : vector<256xf32>
    %23 = vector.multi_reduction <add>, %22, %cst_7 [0] : vector<3x256xf32> to vector<256xf32>
    %24 = vector.shape_cast %23 : vector<256xf32> to vector<1x256xf32>
    %25 = math.log %13 : vector<1x256xf32>
    %26 = arith.addf %8, %25 : vector<1x256xf32>
    %27 = arith.subf %26, %24 : vector<1x256xf32>
    %c0_8 = arith.constant 0 : index
    %c0_9 = arith.constant 0 : index
    %c0_10 = arith.constant 0 : index
    %28 = vector.load %arg4[%c0_8, %c0_9, %c0_10] : memref<1x3x1xf32, #tpu.memory_space<vmem>>, vector<1x3x1xf32>
    %29 = vector.shape_cast %28 : vector<1x3x1xf32> to vector<3x1xf32>
    %30 = arith.mulf %16, %21 : vector<3x256xf32>
    %cst_11 = arith.constant dense<0.000000e+00> : vector<3xf32>
    %31 = vector.multi_reduction <add>, %30, %cst_11 [1] : vector<3x256xf32> to vector<3xf32>
    %32 = vector.shape_cast %31 : vector<3xf32> to vector<3x1xf32>
    %33 = arith.addf %29, %32 : vector<3x1xf32>
    %c0_12 = arith.constant 0 : index
    %c0_13 = arith.constant 0 : index
    %c0_14 = arith.constant 0 : index
    %34 = vector.load %arg4[%c0_12, %c0_13, %c0_14] : memref<1x3x1xf32, #tpu.memory_space<vmem>>, vector<1x3x1xf32>
    %35 = vector.shape_cast %34 : vector<1x3x1xf32> to vector<3x1xf32>
    %36 = vector.shape_cast %33 : vector<3x1xf32> to vector<1x3x1xf32>
    tpu.vector_store %arg4[%c0_12, %c0_13, %c0_14], %36 {strides = array<i32>} : memref<1x3x1xf32, #tpu.memory_space<vmem>>, vector<1x3x1xf32>,
    %c0_15 = arith.constant 0 : index
    %c0_16 = arith.constant 0 : index
    %c0_17 = arith.constant 0 : index
    %37 = vector.load %arg5[%c0_15, %c0_16, %c0_17] : memref<1x3x1xf32, #tpu.memory_space<vmem>>, vector<1x3x1xf32>
    %38 = vector.shape_cast %37 : vector<1x3x1xf32> to vector<3x1xf32>
    %cst_18 = arith.constant dense<0.000000e+00> : vector<3xf32>
    %39 = vector.multi_reduction <add>, %16, %cst_18 [1] : vector<3x256xf32> to vector<3xf32>
    %40 = vector.shape_cast %39 : vector<3xf32> to vector<3x1xf32>
    %41 = arith.addf %38, %40 : vector<3x1xf32>
    %c0_19 = arith.constant 0 : index
    %c0_20 = arith.constant 0 : index
    %c0_21 = arith.constant 0 : index
    %42 = vector.load %arg5[%c0_19, %c0_20, %c0_21] : memref<1x3x1xf32, #tpu.memory_space<vmem>>, vector<1x3x1xf32>
    %43 = vector.shape_cast %42 : vector<1x3x1xf32> to vector<3x1xf32>
    %44 = vector.shape_cast %41 : vector<3x1xf32> to vector<1x3x1xf32>
    tpu.vector_store %arg5[%c0_19, %c0_20, %c0_21], %44 {strides = array<i32>} : memref<1x3x1xf32, #tpu.memory_space<vmem>>, vector<1x3x1xf32>,
    %c0_22 = arith.constant 0 : index
    %c0_23 = arith.constant 0 : index
    %c0_24 = arith.constant 0 : index
    %45 = vector.load %arg6[%c0_22, %c0_23, %c0_24] : memref<1x3x1xf32, #tpu.memory_space<vmem>>, vector<1x3x1xf32>
    %46 = vector.shape_cast %45 : vector<1x3x1xf32> to vector<3x1xf32>
    %cst_25 = arith.constant dense<0.000000e+00> : vector<3xf32>
    %47 = vector.multi_reduction <add>, %21, %cst_25 [1] : vector<3x256xf32> to vector<3xf32>
    %48 = vector.shape_cast %47 : vector<3xf32> to vector<3x1xf32>
    %49 = arith.addf %46, %48 : vector<3x1xf32>
    %c0_26 = arith.constant 0 : index
    %c0_27 = arith.constant 0 : index
    %c0_28 = arith.constant 0 : index
    %50 = vector.load %arg6[%c0_26, %c0_27, %c0_28] : memref<1x3x1xf32, #tpu.memory_space<vmem>>, vector<1x3x1xf32>
    %51 = vector.shape_cast %50 : vector<1x3x1xf32> to vector<3x1xf32>
    %52 = vector.shape_cast %49 : vector<3x1xf32> to vector<1x3x1xf32>
    tpu.vector_store %arg6[%c0_26, %c0_27, %c0_28], %52 {strides = array<i32>} : memref<1x3x1xf32, #tpu.memory_space<vmem>>, vector<1x3x1xf32>,
    %c0_29 = arith.constant 0 : index
    %c0_30 = arith.constant 0 : index
    %c0_31 = arith.constant 0 : index
    %53 = vector.load %arg7[%c0_29, %c0_30, %c0_31] : memref<1x1x1xf32, #tpu.memory_space<vmem>>, vector<1x1x1xf32>
    %54 = vector.shape_cast %53 : vector<1x1x1xf32> to vector<1x1xf32>
    %cst_32 = arith.constant dense<0.000000e+00> : vector<1xf32>
    %55 = vector.multi_reduction <add>, %27, %cst_32 [1] : vector<1x256xf32> to vector<1xf32>
    %56 = vector.shape_cast %55 : vector<1xf32> to vector<1x1xf32>
    %57 = arith.addf %54, %56 : vector<1x1xf32>
    %c0_33 = arith.constant 0 : index
    %c0_34 = arith.constant 0 : index
    %c0_35 = arith.constant 0 : index
    %58 = vector.load %arg7[%c0_33, %c0_34, %c0_35] : memref<1x1x1xf32, #tpu.memory_space<vmem>>, vector<1x1x1xf32>
    %59 = vector.shape_cast %58 : vector<1x1x1xf32> to vector<1x1xf32>
    %60 = vector.shape_cast %57 : vector<1x1xf32> to vector<1x1x1xf32>
    tpu.vector_store %arg7[%c0_33, %c0_34, %c0_35], %60 {strides = array<i32>} : memref<1x1x1xf32, #tpu.memory_space<vmem>>, vector<1x1x1xf32>,
    return
  }
  func.func @transform_0(%arg0: i32, %arg1: i32) -> (i32, i32, i32) {
    %c0_i32 = arith.constant 0 : i32
    %c0_i32_0 = arith.constant 0 : i32
    return %arg0, %c0_i32, %arg1 : i32, i32, i32
  }
  func.func @transform_1(%arg0: i32, %arg1: i32) -> (i32, i32, i32) {
    %c0_i32 = arith.constant 0 : i32
    %c0_i32_0 = arith.constant 0 : i32
    return %arg0, %c0_i32, %arg1 : i32, i32, i32
  }
  func.func @transform_2(%arg0: i32, %arg1: i32) -> (i32, i32, i32) {
    %c0_i32 = arith.constant 0 : i32
    %c0_i32_0 = arith.constant 0 : i32
    %c0_i32_1 = arith.constant 0 : i32
    return %arg0, %c0_i32, %c0_i32_0 : i32, i32, i32
  }
  func.func @transform_3(%arg0: i32, %arg1: i32) -> (i32, i32, i32) {
    %c0_i32 = arith.constant 0 : i32
    %c0_i32_0 = arith.constant 0 : i32
    %c0_i32_1 = arith.constant 0 : i32
    return %arg0, %c0_i32, %c0_i32_0 : i32, i32, i32
  }
  func.func @transform_4(%arg0: i32, %arg1: i32) -> (i32, i32, i32) {
    %c0_i32 = arith.constant 0 : i32
    %c0_i32_0 = arith.constant 0 : i32
    %c0_i32_1 = arith.constant 0 : i32
    return %arg0, %c0_i32, %c0_i32_0 : i32, i32, i32
  }
  func.func @transform_5(%arg0: i32, %arg1: i32) -> (i32, i32, i32) {
    %c0_i32 = arith.constant 0 : i32
    %c0_i32_0 = arith.constant 0 : i32
    %c0_i32_1 = arith.constant 0 : i32
    return %arg0, %c0_i32, %c0_i32_0 : i32, i32, i32
  }
}

</mosaic_0001>

<bundles_post_ra>
// kernel: tpu_custom_call.1
= control target key start
LH: loop header
LB: loop body
LE: loop exit
PB: predicated region body
PF: predicated region fallthrough
CT: control target
= control target key end

     0   :  { %s735_s18 = smov 0   ;;  %s737_s19 = smov 0   ;;  %s825_s0 = inlined_call_operand.vmem [shape: f32[2,3,256], index: 0, kind: input, shape index: {}]   ;;  %s826_s1 = inlined_call_operand.vmem [shape: s32[2,1,256], index: 1, kind: input, shape index: {}]   ;;  %s827_s2 = inlined_call_operand.vmem [shape: f32[2,3,1], index: 2, kind: output, shape index: {0}]   ;;  %s828_s3 = inlined_call_operand.vmem [shape: f32[2,3,1], index: 3, kind: output, shape index: {1}]   ;;  %s829_s4 = inlined_call_operand.vmem [shape: f32[2,3,1], index: 4, kind: output, shape index: {2}]   ;;  %s830_s5 = inlined_call_operand.vmem [shape: f32[2,1,1], index: 5, kind: output, shape index: {3}]  }
   0x1   :  { %s739_s20 = smov 0  }
   0x2 LB: > { %s28_s21 = sadd.s32 1, %s698_s19  ;;  %p632_p0 = scmp.ge.s32.totalorder %s702_s20, 1  ;;  %s702_s20 = sphi %s739_s20, %s16_s20   ;;  %s698_s19 = sphi %s737_s19, %s832_s19   ;;  %s694_s18 = sphi %s735_s18, %s831_s18  }
   0x3   : > { %p30_p1 = scmp.ge.s32.totalorder %s28_s21, 2  ;;  %p229_p2 = scmp.lt.s32.totalorder %s702_s20, 3 }
   0x5   : > { %s834_s21 = smov (%p30_p1, %s28_s21), 0  ;;  %p230_p3 = pnand %p632_p0, %p229_p2 }
   0x6   : > { %p280_p4 = scmp.lt.s32.totalorder (!%p230_p3), %s694_s18, 1 }
   0x7   : > { %233 = sbr.rel (%p230_p3) target bundleno = 237 (0xed), region = 28 }
   0xc   : > { %v374_v0 = vlaneseq  ;;  %s836_s18 = smov (!%p280_p4, %s694_s18), 1  ;;  %vm328_vm0 = vcmask 1042432   ;;  %vm317_vm1 = vcmask 2048   ;;  %v704_v11 = vmov 0.0  }
   0xd   : > { %s635_s22 = sshll.u32 %s836_s18, 1  ;;  %s643_s23 = sshll.u32 %s836_s18, 3  ;;  %vm321_vm4 = vcmask 0  }
   0xe   : > { %v375_v1 = vshrl.u32 %v374_v0, 7  ;;  %s296_s26 = scalar_lea.vmem %s826_s1, %s635_s22  ;;  %s287_s29 = scalar_lea.vmem %s825_s0, %s643_s23 }
   0xf   : > { %v324_v4 = vld [vmem:[%s296_s26] sm:$0x3]  ;;  %s764_s30 = sshll.u32 %s836_s18, 2  ;;  %s312_s14 = scalar_lea.vmem %s830_s5, %s836_s18 }
  0x10   : > { %v378_v2 = vsub.s32 0, %v375_v1  ;;  %v382_v3 = vsub.s32 1, %v375_v1  ;;  %v323_v5 = vld [vmem:[%s287_s29] sm:$0x77]  ;;  %s771_s8 = scalar_lea.vmem %s829_s4, %s764_s30  ;;  %s785_s11 = scalar_lea.vmem %s827_s2, %s764_s30  ;;  %322 = vst.msk [vmem:[%s312_s14] sm:$0x1] %vm321_vm4, %v704_v11 }
  0x11   : > { %v326_v8 = vcombine.high %v323_v5, %v323_v5  ;;  %v329_v9 = vsel %vm328_vm0, %v323_v5, -inf  ;;  %320 = vst.msk [vmem:[%s771_s8] sm:$0x7] %vm317_vm1, %v704_v11  ;;  %318 = vst.msk [vmem:[%s785_s11] sm:$0x7] %vm317_vm1, %v704_v11  ;;  %s305_s17 = scalar_lea.vmem %s828_s3, %s764_s30 }
  0x12   : > { %v379_v6 = vrot.slane %v324_v4, %v378_v2  ;;  %v383_v7 = vrot.slane %v324_v4, %v382_v3  ;;  %v330_v10 = vrot.slane %v329_v9, 4  ;;  %319 = vst.msk [vmem:[%s305_s17] sm:$0x7] %vm317_vm1, %v704_v11 }
  0x13   : > { %v336_v12 = vsel %vm328_vm0, %v326_v8, -inf }
  0x14   : > { %vm384_vm2 = vcmp.eq.s32.totalorder %v379_v6, %v375_v1  ;;  %vm385_vm3 = vcmp.eq.s32.totalorder %v383_v7, %v375_v1  ;;  %v331_v15 = vmax.f32 %v329_v9, %v330_v10  ;;  %v337_v16 = vrot.slane %v336_v12, 4 }
  0x15   : > { %v639_v13 = vsel %vm384_vm2, 1.0, %v704_v11  ;;  %v640_v14 = vsel %vm385_vm3, 1.0, %v704_v11 }
  0x16   : > { %v445_v17 = vsel %vm328_vm0, %v639_v13, 0.0  ;;  %v446_v18 = vsel %vm328_vm0, %v640_v14, 0.0  ;;  %v332_v20 = vrot.slane %v331_v15, 2  ;;  %v338_v21 = vmax.f32 %v336_v12, %v337_v16 }
  0x17   : > { %v447_v19 = vadd.f32 %v446_v18, %v445_v17  ;;  %v392_v32 = vcombine.low %v639_v13, %v640_v14 }
  0x18   : > { %v333_v22 = vmax.f32 %v331_v15, %v332_v20  ;;  %v339_v23 = vrot.slane %v338_v21, 2 }
  0x19   : > { %448 = vadd.xlane.f32.xlu1 %v447_v19  ;;  %v394_v34 = vmul.f32 %v392_v32, %v323_v5 }
  0x1a   : > { %v334_v24 = vrot.slane %v333_v22, 1  ;;  %v340_v25 = vmax.f32 %v338_v21, %v339_v23 }
  0x1b   : > { %v396_v39 = vcombine.high %v394_v34, %v394_v34  ;;  %v398_v42 = vsel %vm328_vm0, %v394_v34, 0.0 }
  0x1c   : > { %v335_v26 = vmax.f32 %v333_v22, %v334_v24  ;;  %v341_v27 = vrot.slane %v340_v25, 1  ;;  %v399_v48 = vrot.slane %v398_v42, 4  ;;  %v444_v24 = vld [vmem:[%s771_s8] sm:$0x7] }
  0x1d   : > { %v405_v45 = vsel %vm328_vm0, %v396_v39, 0.0 }
  0x1e   : > { %v342_v28 = vmax.f32 %v340_v25, %v341_v27  ;;  %v406_v51 = vrot.slane %v405_v45, 4  ;;  %v400_v54 = vadd.f32 %v399_v48, %v398_v42  ;;  %v452_v27 = vld [vmem:[%s312_s14] sm:$0x1] }
  0x20   : > { %v345_v29 = vcombine.low %v335_v26, %v342_v28  ;;  %v407_v56 = vadd.f32 %v406_v51, %v405_v45  ;;  %v401_v57 = vrot.slane %v400_v54, 2 }
  0x22   : > { %v347_v30 = vsub.f32 %v323_v5, %v345_v29  ;;  %v408_v58 = vrot.slane %v407_v56, 2  ;;  %v402_v59 = vadd.f32 %v401_v57, %v400_v54 }
  0x24   : > { %v348_v31 = vmul.f32 1.442695, %v347_v30  ;;  %v409_v60 = vadd.f32 %v408_v58, %v407_v56  ;;  %v403_v61 = vrot.slane %v402_v59, 1 }
  0x26   : > { %670 = vpow2.f32 %v348_v31  ;;  %v410_v63 = vrot.slane %v409_v60, 1  ;;  %v404_v2 = vadd.f32 %v403_v61, %v402_v59 }
  0x28   : > { %v411_v6 = vadd.f32 %v410_v63, %v409_v60 }
  0x33   : > { %v671_v33 = vpop.eup %670 }
  0x34   : > { %v351_v35 = vcombine.high %v671_v33, %v671_v33  ;;  %v353_v36 = vsel %vm328_vm0, %v671_v33, 0.0 }
  0x35   : > { %v354_v37 = vrot.slane %v353_v36, 4 }
  0x36   : > { %v360_v38 = vsel %vm328_vm0, %v351_v35, 0.0 }
  0x37   : > { %v355_v40 = vadd.f32 %v354_v37, %v353_v36  ;;  %v361_v41 = vrot.slane %v360_v38, 4 }
  0x39   : > { %v356_v43 = vrot.slane %v355_v40, 2  ;;  %v362_v44 = vadd.f32 %v361_v41, %v360_v38 }
  0x3b   : > { %v357_v46 = vadd.f32 %v356_v43, %v355_v40  ;;  %v363_v47 = vrot.slane %v362_v44, 2 }
  0x3d   : > { %v358_v49 = vrot.slane %v357_v46, 1  ;;  %v364_v50 = vadd.f32 %v363_v47, %v362_v44 }
  0x3f   : > { %v359_v52 = vadd.f32 %v358_v49, %v357_v46  ;;  %v365_v53 = vrot.slane %v364_v50, 1 }
  0x41   : > { %v366_v55 = vadd.f32 %v365_v53, %v364_v50  ;;  %672 = vrcp.f32 %v359_v52 }
  0x42   : > { %674 = vlog2.f32 %v359_v52 }
  0x43   : > { %676 = vrcp.f32 %v366_v55 }
  0x44   : > { %678 = vlog2.f32 %v366_v55 }
  0x4e   : > { %v673_v62 = vpop.eup %672 }
  0x4f   : > { %v675_v0 = vpop.eup %674 }
  0x50   : > { %v677_v1 = vpop.eup %676  ;;  %v413_v3 = vmul.f32 0.6931472, %v675_v0 }
  0x51   : > { %v679_v4 = vpop.eup %678  ;;  %v371_v5 = vcombine.low %v673_v62, %v677_v1 }
  0x52   : > { %v415_v7 = vmul.f32 0.6931472, %v679_v4  ;;  %v416_v8 = vadd.f32 %v413_v3, %v335_v26 }
  0x53   : > { %v373_v9 = vmul.f32 %v671_v33, %v371_v5  ;;  %v433_v33 = vld [vmem:[%s305_s17] sm:$0x7] }
  0x54   : > { %v417_v10 = vadd.f32 %v415_v7, %v342_v28  ;;  %v418_v12 = vsub.f32 %v416_v8, %v404_v2  ;;  %v420_v28 = vld [vmem:[%s785_s11] sm:$0x7] }
  0x55   : > { %v421_v13 = vmul.f32 %v392_v32, %v373_v9  ;;  %v435_v14 = vcombine.high %v373_v9, %v373_v9  ;;  %v437_v20 = vsel %vm328_vm0, %v373_v9, 0.0 }
  0x56   : > { %v419_v15 = vsub.f32 %v417_v10, %v411_v6 }
  0x57   : > { %v423_v16 = vcombine.high %v421_v13, %v421_v13  ;;  %v425_v17 = vsel %vm328_vm0, %v421_v13, 0.0  ;;  %v438_v21 = vsel %vm328_vm0, %v435_v14, 0.0 }
  0x58   : > { %v453_v18 = vadd.f32 %v419_v15, %v418_v12  ;;  %v439_v23 = vadd.f32 %v438_v21, %v437_v20 }
  0x59   : > { %v426_v19 = vsel %vm328_vm0, %v423_v16, 0.0 }
  0x5a   : > { %v427_v22 = vadd.f32 %v426_v19, %v425_v17  ;;  %454 = vadd.xlane.f32.xlu1 %v453_v18 }
  0x5c   : > { %428 = vadd.xlane.f32.xlu0 %v427_v22 }
  0x60   : > { %440 = vadd.xlane.f32.xlu0 %v439_v23 }
  0xa2   : > { %v449_v25 = vpop.xlane.xlu1 %448 }
  0xa3   : > { %v450_v26 = vadd.f32 %v449_v25, %v444_v24 }
  0xa5   : > { %451 = vst.msk [vmem:[%s771_s8] sm:$0x7] %vm317_vm1, %v450_v26 }
  0xe3   : > { %v455_v29 = vpop.xlane.xlu1 %454 }
  0xe4   : > { %v456_v30 = vadd.f32 %v455_v29, %v452_v27 }
  0xe5   : > { %v429_v31 = vpop.xlane.xlu0 %428 }
  0xe6   : > { %v430_v32 = vadd.f32 %v429_v31, %v420_v28  ;;  %458 = vst.msk [vmem:[%s312_s14] sm:$0x1] %vm321_vm4, %v456_v30 }
  0xe8   : > { %432 = vst.msk [vmem:[%s785_s11] sm:$0x7] %vm317_vm1, %v430_v32 }
  0xe9   : > { %v441_v34 = vpop.xlane.xlu0 %440 }
  0xea   : > { %v442_v35 = vadd.f32 %v441_v34, %v433_v33 }
  0xec   : > { %443 = vst.msk [vmem:[%s305_s17] sm:$0x7] %vm317_vm1, %v442_v35 }
  0xed PF: > { %s16_s20 = sadd.s32 1, %s702_s20   ;;  %s831_s18 = smov %s698_s19 }
  0xee   : > { %p13_p5 = scmp.ge.s32.totalorder %s16_s20, 4   ;;  %s832_s19 = smov %s834_s21 }
  0xf0   :  { %15 = sbr.rel (!%p13_p5) target bundleno = 2 (0x2), region = 101 }

</bundles_post_ra>
